<compile_context>
chip_gen: v6e
topology: v6e:2x2x1
jax: 0.10.0
libtpu: 0.0.40
codegen_flags: <defaults>
</compile_context>

<pallas_src>
import functools
import math

import jax
import jax.numpy as jnp
from jax.experimental import pallas as pl
from jax.experimental.pallas import tpu as pltpu

_LN_EPS = 1e-5
_L2_EPS = 1e-8


def _gelu_erf(x):
    # matches torch.nn.GELU() (approximate='none')
    return 0.5 * x * (1.0 + jax.lax.erf(x * (1.0 / math.sqrt(2.0))))


def _gelu_tanh(x):
    # torch.nn.GELU(approximate='tanh'); tanh runs on the (otherwise idle) EUP
    c = math.sqrt(2.0 / math.pi)
    return 0.5 * x * (1.0 + jnp.tanh(c * (x + 0.044715 * x * x * x)))


def dino_head_kernel(
    x_ref,                       # (TM, E) input rows
    w1_ref, w2_ref, w3_ref,      # (E, E) bf16, stored (in, out); w1 has LN affine folded
    wf_ref,                      # (E, E) bf16 weight-normalized final weight
    b_ref,                       # (3, E) f32 packed biases [b1'; b2; b3]
    o_ref,                       # (TM, E)
    *,
    use_tanh_gelu,
):
    gelu = _gelu_tanh if use_tanh_gelu else _gelu_erf

    x = x_ref[...].astype(jnp.float32)
    bias = b_ref[...]                                   # (3, E) f32

    # ---- LayerNorm core (gamma/beta folded into w1/b1 by the wrapper) ------
    # var = E[x^2] - mu^2 : the two lane reductions are independent and can
    # overlap in the XLU; clamp at 0 against cancellation.
    s1 = jnp.mean(x, axis=-1, keepdims=True)
    s2 = jnp.mean(x * x, axis=-1, keepdims=True)
    var = jnp.maximum(s2 - s1 * s1, 0.0)
    h = (x - s1) * jax.lax.rsqrt(var + _LN_EPS)

    mm_dtype = w1_ref.dtype  # bf16 operands, f32 accumulation on the MXU

    # ---- Linear 1 (+ folded LN affine) + GELU (dropout = identity in eval) -
    h = jnp.dot(h.astype(mm_dtype), w1_ref[...],
                preferred_element_type=jnp.float32) + bias[0:1, :]
    h = gelu(h)

    # ---- Linear 2 + GELU ----------------------------------------------------
    h = jnp.dot(h.astype(mm_dtype), w2_ref[...],
                preferred_element_type=jnp.float32) + bias[1:2, :]
    h = gelu(h)

    # ---- Linear 3 ------------------------------------------------------------
    h = jnp.dot(h.astype(mm_dtype), w3_ref[...],
                preferred_element_type=jnp.float32) + bias[2:3, :]

    # ---- F.normalize(dim=-1, p=2, eps=1e-8):  h / max(||h||, eps) -----------
    ss = jnp.sum(h * h, axis=-1, keepdims=True)
    h = h * jax.lax.rsqrt(jnp.maximum(ss, _L2_EPS * _L2_EPS))

    # ---- weight-normalized final linear (no bias) ---------------------------
    out = jnp.dot(h.astype(mm_dtype), wf_ref[...],
                  preferred_element_type=jnp.float32)
    o_ref[...] = out.astype(o_ref.dtype)


def _cdiv(a, b):
    return -(-a // b)


def _round_up(a, m):
    return _cdiv(a, m) * m


def _choose_tm(rows, tm_target, *, min_split_rows=256):
    """Largest row tile <= tm_target with minimal padding waste.

    Only splits a small row count into >=2 programs when each program still
    gets a substantial (>= min_split_rows) tile: useful on v7x (2 TCs), while
    avoiding pointless grid-step overhead on single-TC v5e/v6e.
    """
    rows = max(int(rows), 1)
    n = _cdiv(rows, max(int(tm_target), 8))
    if n == 1 and rows >= 2 * min_split_rows:
        n = 2
    return max(8, _round_up(_cdiv(rows, n), 8))


def _vmem_capacity_bytes():
    try:
        return int(pltpu.get_tpu_info().vmem_capacity_bytes)
    except Exception:
        return 64 * 2**20  # conservative (v7x-sized) fallback


def prepare_params(raw, *, mm_dtype=jnp.bfloat16):
    """Fold the LayerNorm affine into linear1, cast matmul weights to bf16,
    and pack the three biases into one (3, emb) f32 array."""
    g = raw["ln_g"].reshape(-1)                    # (E,)
    b = raw["ln_b"].reshape(-1)                    # (E,)
    w1 = raw["w1"]                                 # (E, E) stored (in, out)
    w1_f = w1 * g[:, None]                         # diag(g) @ w1
    b1_f = raw["b1"].reshape(-1) + b @ w1          # b1 + beta @ w1
    biases = jnp.stack(
        [b1_f, raw["b2"].reshape(-1), raw["b3"].reshape(-1)], axis=0
    ).astype(jnp.float32)                          # (3, E)
    return {
        "w1": w1_f.astype(mm_dtype),
        "w2": raw["w2"].astype(mm_dtype),
        "w3": raw["w3"].astype(mm_dtype),
        "wf": raw["wf_eff"].astype(mm_dtype),
        "b": biases,
    }


def dino_head_forward(x, params, *, tm=512, use_tanh_gelu=False, out_dtype=None):
    """x: (..., emb).  params: output of prepare_params()."""
    emb = x.shape[-1]
    lead = x.shape[:-1]
    rows = int(math.prod(lead)) if lead else 1
    out_dtype = jnp.dtype(x.dtype if out_dtype is None else out_dtype)
    x2d = x.reshape(rows, emb)

    tm = _choose_tm(rows, tm)
    rows_p = _round_up(rows, tm)
    if rows_p != rows:
        # zero padding is safe through LN (var clamp + eps) and the L2 clamp
        x2d = jnp.pad(x2d, ((0, rows_p - rows), (0, 0)))
    grid = (rows_p // tm,)

    w_bytes = sum(int(params[k].size) * params[k].dtype.itemsize
                  for k in ("w1", "w2", "w3", "wf"))
    b_bytes = int(params["b"].size) * params["b"].dtype.itemsize

    cost = pl.CostEstimate(
        flops=int(8 * rows_p * emb * emb),                       # 4 matmuls
        transcendentals=int(3 * rows_p * emb),                   # 2x GELU + rsqrts
        bytes_accessed=int(w_bytes + b_bytes
                           + rows_p * emb * (x.dtype.itemsize + out_dtype.itemsize)),
    )

    row_spec = pl.BlockSpec((tm, emb), lambda i: (i, 0))

    def run(single_buffer_weights):
        if single_buffer_weights:
            # constant index_map -> fetched once; single VMEM buffer is enough
            mat_spec = pl.BlockSpec((emb, emb), lambda i: (0, 0),
                                    pipeline_mode=pl.Buffered(1))
            vec_spec = pl.BlockSpec((3, emb), lambda i: (0, 0),
                                    pipeline_mode=pl.Buffered(1))
            wb_bufs = 1
        else:
            mat_spec = pl.BlockSpec((emb, emb), lambda i: (0, 0))
            vec_spec = pl.BlockSpec((3, emb), lambda i: (0, 0))
            wb_bufs = 2

        # explicit, generation-aware VMEM budget (leave ~15% compiler headroom)
        io_bytes = 2 * tm * emb * (x.dtype.itemsize + out_dtype.itemsize)
        scratch_bytes = 6 * tm * emb * 4              # f32 intermediates headroom
        need = wb_bufs * (w_bytes + b_bytes) + io_bytes + scratch_bytes
        vmem_limit = int(min(max(int(1.5 * need), 16 * 2**20),
                             int(0.85 * _vmem_capacity_bytes())))

        return pl.pallas_call(
            functools.partial(dino_head_kernel, use_tanh_gelu=use_tanh_gelu),
            out_shape=jax.ShapeDtypeStruct((rows_p, emb), out_dtype),
            grid_spec=pltpu.PrefetchScalarGridSpec(
                num_scalar_prefetch=0,
                grid=grid,
                in_specs=[
                    row_spec,                              # x
                    mat_spec, mat_spec, mat_spec,          # w1 (LN-folded), w2, w3
                    mat_spec,                              # wf (weight-normalized)
                    vec_spec,                              # packed biases (3, E)
                ],
                out_specs=row_spec,
            ),
            compiler_params=pltpu.CompilerParams(
                dimension_semantics=("parallel",),
                vmem_limit_bytes=vmem_limit,
            ),
            cost_estimate=cost,
        )(x2d, params["w1"], params["w2"], params["w3"], params["wf"], params["b"])

    try:
        out2d = run(single_buffer_weights=True)
    except Exception:
        # pl.Buffered(1) not supported by this jax/Mosaic build -> default buffering
        out2d = run(single_buffer_weights=False)

    if rows_p != rows:
        out2d = out2d[:rows]
    return out2d.reshape(*lead, emb)


def init_params(key, emb):
    """Deterministic synthetic parameters with the shapes DinoHead implies."""
    ks = jax.random.split(key, 9)
    scale = 1.0 / math.sqrt(emb)

    def lin(kw, kb):
        # stored as (in, out) for row-major `h @ W` in the kernel
        w = jax.random.uniform(kw, (emb, emb), jnp.float32, -scale, scale)
        b = jax.random.uniform(kb, (1, emb), jnp.float32, -scale, scale)
        return w, b

    w1, b1 = lin(ks[0], ks[1])
    w2, b2 = lin(ks[2], ks[3])
    w3, b3 = lin(ks[4], ks[5])

    # weight_norm(Linear(emb, emb, bias=False)) with weight_g filled with 1:
    # effective weight rows = v_row / ||v_row||_2; stored transposed (in, out).
    v = jax.random.uniform(ks[6], (emb, emb), jnp.float32, -scale, scale)  # (out, in)
    wf = v / jnp.sqrt(jnp.sum(v * v, axis=1, keepdims=True))
    wf_eff = wf.T

    # non-trivial LN affine so the wrapper-side fold is actually exercised
    ln_g = 1.0 + 0.1 * jax.random.normal(ks[7], (1, emb), jnp.float32)
    ln_b = 0.1 * jax.random.normal(ks[8], (1, emb), jnp.float32)

    return {
        "ln_g": ln_g, "ln_b": ln_b,
        "w1": w1, "b1": b1,
        "w2": w2, "b2": b2,
        "w3": w3, "b3": b3,
        "wf_eff": wf_eff,
    }


def dino_head_ref(x, p):
    """Pure-JAX f32 reference (torch-equivalent eval-mode semantics)."""
    mu = jnp.mean(x, axis=-1, keepdims=True)
    var = jnp.mean((x - mu) ** 2, axis=-1, keepdims=True)
    h = (x - mu) / jnp.sqrt(var + _LN_EPS) * p["ln_g"][0] + p["ln_b"][0]
    h = _gelu_erf(h @ p["w1"] + p["b1"][0])
    h = _gelu_erf(h @ p["w2"] + p["b2"][0])
    h = h @ p["w3"] + p["b3"][0]
    n = jnp.sqrt(jnp.sum(h * h, axis=-1, keepdims=True))
    h = h / jnp.maximum(n, _L2_EPS)
    return h @ p["wf_eff"]


def dino_head_ref_matched(x, prepared, *, use_tanh_gelu=False):
    """Reference mirroring the kernel numerics (bf16 operands, f32 accumulate,
    E[x^2]-mu^2 LayerNorm, rsqrt-based normalize)."""
    gelu = _gelu_tanh if use_tanh_gelu else _gelu_erf
    s1 = jnp.mean(x, axis=-1, keepdims=True)
    s2 = jnp.mean(x * x, axis=-1, keepdims=True)
    var = jnp.maximum(s2 - s1 * s1, 0.0)
    h = (x - s1) * jax.lax.rsqrt(var + _LN_EPS)
    dt = prepared["w1"].dtype

    def mm(a, w):
        return jnp.dot(a.astype(dt), w, preferred_element_type=jnp.float32)

    h = gelu(mm(h, prepared["w1"]) + prepared["b"][0])
    h = gelu(mm(h, prepared["w2"]) + prepared["b"][1])
    h = mm(h, prepared["w3"]) + prepared["b"][2]
    ss = jnp.sum(h * h, axis=-1, keepdims=True)
    h = h * jax.lax.rsqrt(jnp.maximum(ss, _L2_EPS * _L2_EPS))
    return mm(h, prepared["wf"])


if __name__ == "__main__":
    key = jax.random.PRNGKey(0)
    k_x, k_p, k_x2 = jax.random.split(key, 3)

    # small shapes consistent with the module: (batch, seq, emb).
    # emb kept a multiple of 128 so the lane dimension is dense (unmasked vst).
    B, S, E = 2, 8, 128
    x = jax.random.normal(k_x, (B, S, E), jnp.float32)
    raw = init_params(k_p, E)
    params = prepare_params(raw, mm_dtype=jnp.bfloat16)

    out = jax.block_until_ready(dino_head_forward(x, params))
    assert out.shape == (B, S, E)

    # check against a reference with the kernel's exact matmul/LN numerics
    ref_m = dino_head_ref_matched(x.reshape(-1, E), params).reshape(B, S, E)
    assert jnp.allclose(out, ref_m, atol=1e-3, rtol=1e-3), (
        f"matched-ref max abs err {jnp.max(jnp.abs(out - ref_m))}"
    )

    # check against the full-f32 torch-equivalent reference
    # (tolerance covers bf16 weight/operand quantization of the MXU path)
    ref = dino_head_ref(x.reshape(-1, E), raw).reshape(B, S, E)
    assert jnp.allclose(out, ref, atol=5e-2, rtol=5e-2), (
        f"f32-ref max abs err {jnp.max(jnp.abs(out - ref))}"
    )

    # second case: many rows -> multi-program grid (tm<=512) + row-padding path
    x2 = jax.random.normal(k_x2, (1000, E), jnp.float32)
    out2 = jax.block_until_ready(dino_head_forward(x2, params))
    assert out2.shape == (1000, E)
    ref2 = dino_head_ref_matched(x2, params)
    assert jnp.allclose(out2, ref2, atol=1e-3, rtol=1e-3), (
        f"multi-tile matched-ref max abs err {jnp.max(jnp.abs(out2 - ref2))}"
    )

    print("KERNEL_OK")
</pallas_src>

<mosaic_0001>
module attributes {stable_mosaic.version = 11 : i64} {
  func.func @dino_head_kernel(%arg0: i32, %arg1: memref<16x128xf32, #tpu.memory_space<vmem>>, %arg2: memref<128x128xbf16, #tpu.memory_space<vmem>>, %arg3: memref<128x128xbf16, #tpu.memory_space<vmem>>, %arg4: memref<128x128xbf16, #tpu.memory_space<vmem>>, %arg5: memref<128x128xbf16, #tpu.memory_space<vmem>>, %arg6: memref<3x128xf32, #tpu.memory_space<vmem>>, %arg7: memref<16x128xf32, #tpu.memory_space<vmem>>) attributes {dimension_semantics = [#tpu.dimension_semantics<parallel>], iteration_bounds = array<i64: 1>, scalar_prefetch = 0 : i64, scratch_operands = 0 : i64, tpu.core_type = #tpu.core_type<tc>, window_params = [{transform_indices = @transform_0, window_bounds = array<i64: 16, 128>}, {pipeline_mode = #tpu.pipeline_mode<synchronous>, transform_indices = @transform_1, window_bounds = array<i64: 128, 128>}, {pipeline_mode = #tpu.pipeline_mode<synchronous>, transform_indices = @transform_2, window_bounds = array<i64: 128, 128>}, {pipeline_mode = #tpu.pipeline_mode<synchronous>, transform_indices = @transform_3, window_bounds = array<i64: 128, 128>}, {pipeline_mode = #tpu.pipeline_mode<synchronous>, transform_indices = @transform_4, window_bounds = array<i64: 128, 128>}, {pipeline_mode = #tpu.pipeline_mode<synchronous>, transform_indices = @transform_5, window_bounds = array<i64: 3, 128>}, {transform_indices = @transform_6, window_bounds = array<i64: 16, 128>}]} {
    %c0 = arith.constant 0 : index
    %c0_0 = arith.constant 0 : index
    %0 = vector.load %arg1[%c0, %c0_0] : memref<16x128xf32, #tpu.memory_space<vmem>>, vector<16x128xf32>
    %c0_1 = arith.constant 0 : index
    %c0_2 = arith.constant 0 : index
    %1 = vector.load %arg6[%c0_1, %c0_2] : memref<3x128xf32, #tpu.memory_space<vmem>>, vector<3x128xf32>
    %cst = arith.constant dense<0.000000e+00> : vector<16xf32>
    %2 = vector.multi_reduction <add>, %0, %cst [1] : vector<16x128xf32> to vector<16xf32>
    %3 = vector.shape_cast %2 : vector<16xf32> to vector<16x1xf32>
    %cst_3 = arith.constant 1.280000e+02 : f32
    %4 = vector.broadcast %cst_3 : f32 to vector<16x1xf32>
    %5 = arith.divf %3, %4 : vector<16x1xf32>
    %6 = arith.mulf %0, %0 : vector<16x128xf32>
    %cst_4 = arith.constant dense<0.000000e+00> : vector<16xf32>
    %7 = vector.multi_reduction <add>, %6, %cst_4 [1] : vector<16x128xf32> to vector<16xf32>
    %8 = vector.shape_cast %7 : vector<16xf32> to vector<16x1xf32>
    %cst_5 = arith.constant 1.280000e+02 : f32
    %9 = vector.broadcast %cst_5 : f32 to vector<16x1xf32>
    %10 = arith.divf %8, %9 : vector<16x1xf32>
    %11 = arith.mulf %5, %5 : vector<16x1xf32>
    %12 = arith.subf %10, %11 : vector<16x1xf32>
    %cst_6 = arith.constant 0.000000e+00 : f32
    %13 = vector.broadcast %cst_6 : f32 to vector<16x1xf32>
    %14 = arith.maximumf %12, %13 : vector<16x1xf32>
    %15 = vector.broadcast %5 : vector<16x1xf32> to vector<16x128xf32>
    %16 = arith.subf %0, %15 : vector<16x128xf32>
    %cst_7 = arith.constant 9.99999974E-6 : f32
    %17 = vector.broadcast %cst_7 : f32 to vector<16x1xf32>
    %18 = arith.addf %14, %17 : vector<16x1xf32>
    %19 = math.rsqrt %18 : vector<16x1xf32>
    %20 = vector.broadcast %19 : vector<16x1xf32> to vector<16x128xf32>
    %21 = arith.mulf %16, %20 : vector<16x128xf32>
    %22 = arith.truncf %21 : vector<16x128xf32> to vector<16x128xbf16>
    %c0_8 = arith.constant 0 : index
    %c0_9 = arith.constant 0 : index
    %23 = vector.load %arg2[%c0_8, %c0_9] : memref<128x128xbf16, #tpu.memory_space<vmem>>, vector<128x128xbf16>
    %cst_10 = arith.constant dense<0.000000e+00> : vector<16x128xf32>
    %24 = tpu.matmul %22, %23, %cst_10 {dimension_numbers = #tpu.dot_dimension_numbers<[1], [0], [0], [1], [0, 0, 1, 1], [], []>} : vector<16x128xbf16>, vector<128x128xbf16>, vector<16x128xf32> -> vector<16x128xf32>
    %25 = vector.extract_strided_slice %1 {offsets = [0, 0], sizes = [1, 128], strides = [1, 1]} : vector<3x128xf32> to vector<1x128xf32>
    %26 = vector.broadcast %25 : vector<1x128xf32> to vector<16x128xf32>
    %27 = arith.addf %24, %26 : vector<16x128xf32>
    %cst_11 = arith.constant 5.000000e-01 : f32
    %28 = vector.broadcast %cst_11 : f32 to vector<16x128xf32>
    %29 = arith.mulf %28, %27 : vector<16x128xf32>
    %cst_12 = arith.constant 0.707106769 : f32
    %30 = vector.broadcast %cst_12 : f32 to vector<16x128xf32>
    %31 = arith.mulf %27, %30 : vector<16x128xf32>
    %32 = math.erf %31 : vector<16x128xf32>
    %cst_13 = arith.constant 1.000000e+00 : f32
    %33 = vector.broadcast %cst_13 : f32 to vector<16x128xf32>
    %34 = arith.addf %33, %32 : vector<16x128xf32>
    %35 = arith.mulf %29, %34 : vector<16x128xf32>
    %36 = arith.truncf %35 : vector<16x128xf32> to vector<16x128xbf16>
    %c0_14 = arith.constant 0 : index
    %c0_15 = arith.constant 0 : index
    %37 = vector.load %arg3[%c0_14, %c0_15] : memref<128x128xbf16, #tpu.memory_space<vmem>>, vector<128x128xbf16>
    %cst_16 = arith.constant dense<0.000000e+00> : vector<16x128xf32>
    %38 = tpu.matmul %36, %37, %cst_16 {dimension_numbers = #tpu.dot_dimension_numbers<[1], [0], [0], [1], [0, 0, 1, 1], [], []>} : vector<16x128xbf16>, vector<128x128xbf16>, vector<16x128xf32> -> vector<16x128xf32>
    %39 = vector.extract_strided_slice %1 {offsets = [1, 0], sizes = [1, 128], strides = [1, 1]} : vector<3x128xf32> to vector<1x128xf32>
    %40 = vector.broadcast %39 : vector<1x128xf32> to vector<16x128xf32>
    %41 = arith.addf %38, %40 : vector<16x128xf32>
    %cst_17 = arith.constant 5.000000e-01 : f32
    %42 = vector.broadcast %cst_17 : f32 to vector<16x128xf32>
    %43 = arith.mulf %42, %41 : vector<16x128xf32>
    %cst_18 = arith.constant 0.707106769 : f32
    %44 = vector.broadcast %cst_18 : f32 to vector<16x128xf32>
    %45 = arith.mulf %41, %44 : vector<16x128xf32>
    %46 = math.erf %45 : vector<16x128xf32>
    %cst_19 = arith.constant 1.000000e+00 : f32
    %47 = vector.broadcast %cst_19 : f32 to vector<16x128xf32>
    %48 = arith.addf %47, %46 : vector<16x128xf32>
    %49 = arith.mulf %43, %48 : vector<16x128xf32>
    %50 = arith.truncf %49 : vector<16x128xf32> to vector<16x128xbf16>
    %c0_20 = arith.constant 0 : index
    %c0_21 = arith.constant 0 : index
    %51 = vector.load %arg4[%c0_20, %c0_21] : memref<128x128xbf16, #tpu.memory_space<vmem>>, vector<128x128xbf16>
    %cst_22 = arith.constant dense<0.000000e+00> : vector<16x128xf32>
    %52 = tpu.matmul %50, %51, %cst_22 {dimension_numbers = #tpu.dot_dimension_numbers<[1], [0], [0], [1], [0, 0, 1, 1], [], []>} : vector<16x128xbf16>, vector<128x128xbf16>, vector<16x128xf32> -> vector<16x128xf32>
    %53 = vector.extract_strided_slice %1 {offsets = [2, 0], sizes = [1, 128], strides = [1, 1]} : vector<3x128xf32> to vector<1x128xf32>
    %54 = vector.broadcast %53 : vector<1x128xf32> to vector<16x128xf32>
    %55 = arith.addf %52, %54 : vector<16x128xf32>
    %56 = arith.mulf %55, %55 : vector<16x128xf32>
    %cst_23 = arith.constant dense<0.000000e+00> : vector<16xf32>
    %57 = vector.multi_reduction <add>, %56, %cst_23 [1] : vector<16x128xf32> to vector<16xf32>
    %58 = vector.shape_cast %57 : vector<16xf32> to vector<16x1xf32>
    %cst_24 = arith.constant 1.000000e-16 : f32
    %59 = vector.broadcast %cst_24 : f32 to vector<16x1xf32>
    %60 = arith.maximumf %58, %59 : vector<16x1xf32>
    %61 = math.rsqrt %60 : vector<16x1xf32>
    %62 = vector.broadcast %61 : vector<16x1xf32> to vector<16x128xf32>
    %63 = arith.mulf %55, %62 : vector<16x128xf32>
    %64 = arith.truncf %63 : vector<16x128xf32> to vector<16x128xbf16>
    %c0_25 = arith.constant 0 : index
    %c0_26 = arith.constant 0 : index
    %65 = vector.load %arg5[%c0_25, %c0_26] : memref<128x128xbf16, #tpu.memory_space<vmem>>, vector<128x128xbf16>
    %cst_27 = arith.constant dense<0.000000e+00> : vector<16x128xf32>
    %66 = tpu.matmul %64, %65, %cst_27 {dimension_numbers = #tpu.dot_dimension_numbers<[1], [0], [0], [1], [0, 0, 1, 1], [], []>} : vector<16x128xbf16>, vector<128x128xbf16>, vector<16x128xf32> -> vector<16x128xf32>
    %c0_28 = arith.constant 0 : index
    %c0_29 = arith.constant 0 : index
    %67 = vector.load %arg7[%c0_28, %c0_29] : memref<16x128xf32, #tpu.memory_space<vmem>>, vector<16x128xf32>
    tpu.vector_store %arg7[%c0_28, %c0_29], %66 {strides = array<i32>} : memref<16x128xf32, #tpu.memory_space<vmem>>, vector<16x128xf32>,
    return
  }
  func.func @transform_0(%arg0: i32) -> (i32, i32) {
    %c0_i32 = arith.constant 0 : i32
    %c0_i32_0 = arith.constant 0 : i32
    return %arg0, %c0_i32 : i32, i32
  }
  func.func @transform_1(%arg0: i32) -> (i32, i32) {
    %c0_i32 = arith.constant 0 : i32
    %c0_i32_0 = arith.constant 0 : i32
    %c0_i32_1 = arith.constant 0 : i32
    return %c0_i32, %c0_i32_0 : i32, i32
  }
  func.func @transform_2(%arg0: i32) -> (i32, i32) {
    %c0_i32 = arith.constant 0 : i32
    %c0_i32_0 = arith.constant 0 : i32
    %c0_i32_1 = arith.constant 0 : i32
    return %c0_i32, %c0_i32_0 : i32, i32
  }
  func.func @transform_3(%arg0: i32) -> (i32, i32) {
    %c0_i32 = arith.constant 0 : i32
    %c0_i32_0 = arith.constant 0 : i32
    %c0_i32_1 = arith.constant 0 : i32
    return %c0_i32, %c0_i32_0 : i32, i32
  }
  func.func @transform_4(%arg0: i32) -> (i32, i32) {
    %c0_i32 = arith.constant 0 : i32
    %c0_i32_0 = arith.constant 0 : i32
    %c0_i32_1 = arith.constant 0 : i32
    return %c0_i32, %c0_i32_0 : i32, i32
  }
  func.func @transform_5(%arg0: i32) -> (i32, i32) {
    %c0_i32 = arith.constant 0 : i32
    %c0_i32_0 = arith.constant 0 : i32
    %c0_i32_1 = arith.constant 0 : i32
    return %c0_i32, %c0_i32_0 : i32, i32
  }
  func.func @transform_6(%arg0: i32) -> (i32, i32) {
    %c0_i32 = arith.constant 0 : i32
    %c0_i32_0 = arith.constant 0 : i32
    return %arg0, %c0_i32 : i32, i32
  }
}

module attributes {stable_mosaic.version = 11 : i64} {
  func.func @dino_head_kernel(%arg0: i32, %arg1: memref<16x128xf32, #tpu.memory_space<vmem>>, %arg2: memref<128x128xbf16, #tpu.memory_space<vmem>>, %arg3: memref<128x128xbf16, #tpu.memory_space<vmem>>, %arg4: memref<128x128xbf16, #tpu.memory_space<vmem>>, %arg5: memref<128x128xbf16, #tpu.memory_space<vmem>>, %arg6: memref<3x128xf32, #tpu.memory_space<vmem>>, %arg7: memref<16x128xf32, #tpu.memory_space<vmem>>) attributes {dimension_semantics = [#tpu.dimension_semantics<parallel>], iteration_bounds = array<i64: 1>, scalar_prefetch = 0 : i64, scratch_operands = 0 : i64, tpu.core_type = #tpu.core_type<tc>, window_params = [{transform_indices = @transform_0, window_bounds = array<i64: 16, 128>}, {pipeline_mode = #tpu.pipeline_mode<synchronous>, transform_indices = @transform_1, window_bounds = array<i64: 128, 128>}, {pipeline_mode = #tpu.pipeline_mode<synchronous>, transform_indices = @transform_2, window_bounds = array<i64: 128, 128>}, {pipeline_mode = #tpu.pipeline_mode<synchronous>, transform_indices = @transform_3, window_bounds = array<i64: 128, 128>}, {pipeline_mode = #tpu.pipeline_mode<synchronous>, transform_indices = @transform_4, window_bounds = array<i64: 128, 128>}, {pipeline_mode = #tpu.pipeline_mode<synchronous>, transform_indices = @transform_5, window_bounds = array<i64: 3, 128>}, {transform_indices = @transform_6, window_bounds = array<i64: 16, 128>}]} {
    %c0 = arith.constant 0 : index
    %c0_0 = arith.constant 0 : index
    %0 = vector.load %arg1[%c0, %c0_0] : memref<16x128xf32, #tpu.memory_space<vmem>>, vector<16x128xf32>
    %c0_1 = arith.constant 0 : index
    %c0_2 = arith.constant 0 : index
    %1 = vector.load %arg6[%c0_1, %c0_2] : memref<3x128xf32, #tpu.memory_space<vmem>>, vector<3x128xf32>
    %cst = arith.constant dense<0.000000e+00> : vector<16xf32>
    %2 = vector.multi_reduction <add>, %0, %cst [1] : vector<16x128xf32> to vector<16xf32>
    %3 = vector.shape_cast %2 : vector<16xf32> to vector<16x1xf32>
    %cst_3 = arith.constant 1.280000e+02 : f32
    %4 = vector.broadcast %cst_3 : f32 to vector<16x1xf32>
    %5 = arith.divf %3, %4 : vector<16x1xf32>
    %6 = arith.mulf %0, %0 : vector<16x128xf32>
    %cst_4 = arith.constant dense<0.000000e+00> : vector<16xf32>
    %7 = vector.multi_reduction <add>, %6, %cst_4 [1] : vector<16x128xf32> to vector<16xf32>
    %8 = vector.shape_cast %7 : vector<16xf32> to vector<16x1xf32>
    %cst_5 = arith.constant 1.280000e+02 : f32
    %9 = vector.broadcast %cst_5 : f32 to vector<16x1xf32>
    %10 = arith.divf %8, %9 : vector<16x1xf32>
    %11 = arith.mulf %5, %5 : vector<16x1xf32>
    %12 = arith.subf %10, %11 : vector<16x1xf32>
    %cst_6 = arith.constant 0.000000e+00 : f32
    %13 = vector.broadcast %cst_6 : f32 to vector<16x1xf32>
    %14 = arith.maximumf %12, %13 : vector<16x1xf32>
    %15 = vector.broadcast %5 : vector<16x1xf32> to vector<16x128xf32>
    %16 = arith.subf %0, %15 : vector<16x128xf32>
    %cst_7 = arith.constant 9.99999974E-6 : f32
    %17 = vector.broadcast %cst_7 : f32 to vector<16x1xf32>
    %18 = arith.addf %14, %17 : vector<16x1xf32>
    %19 = math.rsqrt %18 : vector<16x1xf32>
    %20 = vector.broadcast %19 : vector<16x1xf32> to vector<16x128xf32>
    %21 = arith.mulf %16, %20 : vector<16x128xf32>
    %22 = arith.truncf %21 : vector<16x128xf32> to vector<16x128xbf16>
    %c0_8 = arith.constant 0 : index
    %c0_9 = arith.constant 0 : index
    %23 = vector.load %arg2[%c0_8, %c0_9] : memref<128x128xbf16, #tpu.memory_space<vmem>>, vector<128x128xbf16>
    %cst_10 = arith.constant dense<0.000000e+00> : vector<16x128xf32>
    %24 = tpu.matmul %22, %23, %cst_10 {dimension_numbers = #tpu.dot_dimension_numbers<[1], [0], [0], [1], [0, 0, 1, 1], [], []>} : vector<16x128xbf16>, vector<128x128xbf16>, vector<16x128xf32> -> vector<16x128xf32>
    %25 = vector.extract_strided_slice %1 {offsets = [0, 0], sizes = [1, 128], strides = [1, 1]} : vector<3x128xf32> to vector<1x128xf32>
    %26 = vector.broadcast %25 : vector<1x128xf32> to vector<16x128xf32>
    %27 = arith.addf %24, %26 : vector<16x128xf32>
    %cst_11 = arith.constant 5.000000e-01 : f32
    %28 = vector.broadcast %cst_11 : f32 to vector<16x128xf32>
    %29 = arith.mulf %28, %27 : vector<16x128xf32>
    %cst_12 = arith.constant 0.707106769 : f32
    %30 = vector.broadcast %cst_12 : f32 to vector<16x128xf32>
    %31 = arith.mulf %27, %30 : vector<16x128xf32>
    %32 = math.erf %31 : vector<16x128xf32>
    %cst_13 = arith.constant 1.000000e+00 : f32
    %33 = vector.broadcast %cst_13 : f32 to vector<16x128xf32>
    %34 = arith.addf %33, %32 : vector<16x128xf32>
    %35 = arith.mulf %29, %34 : vector<16x128xf32>
    %36 = arith.truncf %35 : vector<16x128xf32> to vector<16x128xbf16>
    %c0_14 = arith.constant 0 : index
    %c0_15 = arith.constant 0 : index
    %37 = vector.load %arg3[%c0_14, %c0_15] : memref<128x128xbf16, #tpu.memory_space<vmem>>, vector<128x128xbf16>
    %cst_16 = arith.constant dense<0.000000e+00> : vector<16x128xf32>
    %38 = tpu.matmul %36, %37, %cst_16 {dimension_numbers = #tpu.dot_dimension_numbers<[1], [0], [0], [1], [0, 0, 1, 1], [], []>} : vector<16x128xbf16>, vector<128x128xbf16>, vector<16x128xf32> -> vector<16x128xf32>
    %39 = vector.extract_strided_slice %1 {offsets = [1, 0], sizes = [1, 128], strides = [1, 1]} : vector<3x128xf32> to vector<1x128xf32>
    %40 = vector.broadcast %39 : vector<1x128xf32> to vector<16x128xf32>
    %41 = arith.addf %38, %40 : vector<16x128xf32>
    %cst_17 = arith.constant 5.000000e-01 : f32
    %42 = vector.broadcast %cst_17 : f32 to vector<16x128xf32>
    %43 = arith.mulf %42, %41 : vector<16x128xf32>
    %cst_18 = arith.constant 0.707106769 : f32
    %44 = vector.broadcast %cst_18 : f32 to vector<16x128xf32>
    %45 = arith.mulf %41, %44 : vector<16x128xf32>
    %46 = math.erf %45 : vector<16x128xf32>
    %cst_19 = arith.constant 1.000000e+00 : f32
    %47 = vector.broadcast %cst_19 : f32 to vector<16x128xf32>
    %48 = arith.addf %47, %46 : vector<16x128xf32>
    %49 = arith.mulf %43, %48 : vector<16x128xf32>
    %50 = arith.truncf %49 : vector<16x128xf32> to vector<16x128xbf16>
    %c0_20 = arith.constant 0 : index
    %c0_21 = arith.constant 0 : index
    %51 = vector.load %arg4[%c0_20, %c0_21] : memref<128x128xbf16, #tpu.memory_space<vmem>>, vector<128x128xbf16>
    %cst_22 = arith.constant dense<0.000000e+00> : vector<16x128xf32>
    %52 = tpu.matmul %50, %51, %cst_22 {dimension_numbers = #tpu.dot_dimension_numbers<[1], [0], [0], [1], [0, 0, 1, 1], [], []>} : vector<16x128xbf16>, vector<128x128xbf16>, vector<16x128xf32> -> vector<16x128xf32>
    %53 = vector.extract_strided_slice %1 {offsets = [2, 0], sizes = [1, 128], strides = [1, 1]} : vector<3x128xf32> to vector<1x128xf32>
    %54 = vector.broadcast %53 : vector<1x128xf32> to vector<16x128xf32>
    %55 = arith.addf %52, %54 : vector<16x128xf32>
    %56 = arith.mulf %55, %55 : vector<16x128xf32>
    %cst_23 = arith.constant dense<0.000000e+00> : vector<16xf32>
    %57 = vector.multi_reduction <add>, %56, %cst_23 [1] : vector<16x128xf32> to vector<16xf32>
    %58 = vector.shape_cast %57 : vector<16xf32> to vector<16x1xf32>
    %cst_24 = arith.constant 1.000000e-16 : f32
    %59 = vector.broadcast %cst_24 : f32 to vector<16x1xf32>
    %60 = arith.maximumf %58, %59 : vector<16x1xf32>
    %61 = math.rsqrt %60 : vector<16x1xf32>
    %62 = vector.broadcast %61 : vector<16x1xf32> to vector<16x128xf32>
    %63 = arith.mulf %55, %62 : vector<16x128xf32>
    %64 = arith.truncf %63 : vector<16x128xf32> to vector<16x128xbf16>
    %c0_25 = arith.constant 0 : index
    %c0_26 = arith.constant 0 : index
    %65 = vector.load %arg5[%c0_25, %c0_26] : memref<128x128xbf16, #tpu.memory_space<vmem>>, vector<128x128xbf16>
    %cst_27 = arith.constant dense<0.000000e+00> : vector<16x128xf32>
    %66 = tpu.matmul %64, %65, %cst_27 {dimension_numbers = #tpu.dot_dimension_numbers<[1], [0], [0], [1], [0, 0, 1, 1], [], []>} : vector<16x128xbf16>, vector<128x128xbf16>, vector<16x128xf32> -> vector<16x128xf32>
    %c0_28 = arith.constant 0 : index
    %c0_29 = arith.constant 0 : index
    %67 = vector.load %arg7[%c0_28, %c0_29] : memref<16x128xf32, #tpu.memory_space<vmem>>, vector<16x128xf32>
    tpu.vector_store %arg7[%c0_28, %c0_29], %66 {strides = array<i32>} : memref<16x128xf32, #tpu.memory_space<vmem>>, vector<16x128xf32>,
    return
  }
  func.func @transform_0(%arg0: i32) -> (i32, i32) {
    %c0_i32 = arith.constant 0 : i32
    %c0_i32_0 = arith.constant 0 : i32
    return %arg0, %c0_i32 : i32, i32
  }
  func.func @transform_1(%arg0: i32) -> (i32, i32) {
    %c0_i32 = arith.constant 0 : i32
    %c0_i32_0 = arith.constant 0 : i32
    %c0_i32_1 = arith.constant 0 : i32
    return %c0_i32, %c0_i32_0 : i32, i32
  }
  func.func @transform_2(%arg0: i32) -> (i32, i32) {
    %c0_i32 = arith.constant 0 : i32
    %c0_i32_0 = arith.constant 0 : i32
    %c0_i32_1 = arith.constant 0 : i32
    return %c0_i32, %c0_i32_0 : i32, i32
  }
  func.func @transform_3(%arg0: i32) -> (i32, i32) {
    %c0_i32 = arith.constant 0 : i32
    %c0_i32_0 = arith.constant 0 : i32
    %c0_i32_1 = arith.constant 0 : i32
    return %c0_i32, %c0_i32_0 : i32, i32
  }
  func.func @transform_4(%arg0: i32) -> (i32, i32) {
    %c0_i32 = arith.constant 0 : i32
    %c0_i32_0 = arith.constant 0 : i32
    %c0_i32_1 = arith.constant 0 : i32
    return %c0_i32, %c0_i32_0 : i32, i32
  }
  func.func @transform_5(%arg0: i32) -> (i32, i32) {
    %c0_i32 = arith.constant 0 : i32
    %c0_i32_0 = arith.constant 0 : i32
    %c0_i32_1 = arith.constant 0 : i32
    return %c0_i32, %c0_i32_0 : i32, i32
  }
  func.func @transform_6(%arg0: i32) -> (i32, i32) {
    %c0_i32 = arith.constant 0 : i32
    %c0_i32_0 = arith.constant 0 : i32
    return %arg0, %c0_i32 : i32, i32
  }
}

</mosaic_0001>

<bundles_post_ra>
// kernel: tpu_custom_call.1
= control target key start
LH: loop header
LB: loop body
LE: loop exit
PB: predicated region body
PF: predicated region fallthrough
CT: control target
= control target key end

     0   :  { %11 = vsyncpa [#allocation3], 0  ;;  %s1098_s0 = inlined_call_operand.hbm [shape: f32[16,128], index: 0, kind: input, shape index: {}]   ;;  %s1099_s1 = inlined_call_operand.hbm [shape: bf16[128,128], index: 1, kind: input, shape index: {}]   ;;  %s1100_s2 = inlined_call_operand.hbm [shape: bf16[128,128], index: 2, kind: input, shape index: {}]   ;;  %s1101_s3 = inlined_call_operand.hbm [shape: bf16[128,128], index: 3, kind: input, shape index: {}]   ;;  %s1102_s4 = inlined_call_operand.hbm [shape: bf16[128,128], index: 4, kind: input, shape index: {}]   ;;  %s1103_s5 = inlined_call_operand.vmem [shape: f32[3,128], index: 5, kind: input, shape index: {}]   ;;  %s1104_s6 = inlined_call_operand.hbm [shape: f32[16,128], index: 6, kind: output, shape index: {}]  }
   0x1   :  { %12 = vsyncpa [#allocation6], 0 }
   0x2   :  { %13 = vsyncpa [#allocation9], 0 }
   0x3   :  { %14 = vsyncpa [#allocation4], 0  ;;  %s950_s21 = smov [#allocation5]  }
   0x4   :  { %s32_s22 = sshll.u32 %s950_s21, 4  ;;  %s33_s22 = int_to_ptr.vmem [resolvable:$true] %s32_s22 }
   0x5   :  { %s830_s23 = scalar_lea.vmem %s33_s22, 1024  ;;  %p835_p1 = scmp.lt.s32.totalorder %s33_s22, %s33_s22 }
   0x6   :  { %p831_p0 = scmp.ne.s32.totalorder %s33_s22, %s830_s23  ;;  %p836_p2 = scmp.lt.s32.totalorder %s830_s23, %s830_s23 }
   0x8   :  { %p837_p3 = por %p836_p2, %p835_p1 }
   0xa   :  { %p838_p4 = pnand %p837_p3, %p831_p0 }
   0xc   :  { %841 = shalt.err (!%p838_p4)
}
   0xd   :  { %s951_s24 = smov 64   ;;  %s952_s25 = smov 4  }
   0xe   :  { %38 = dma.hbm_to_vmem [thread:$0]  %s1099_s1, 1024, %s33_s22, [#allocation6], %s951_s24, %s951_s24, %s952_s25  }
   0xf   :  { %s953_s28 = smov [#allocation8]   ;;  %s954_s30 = smov [#allocation2]  }
  0x10   :  { %s56_s29 = sshll.u32 %s953_s28, 4  ;;  %s20_s7 = sshll.u32 %s954_s30, 4  ;;  %s57_s29 = int_to_ptr.vmem [resolvable:$true] %s56_s29  ;;  %s21_s7 = int_to_ptr.vmem [resolvable:$true] %s20_s7 }
  0x11   :  { %s850_s8 = scalar_lea.vmem %s57_s29, 1024  ;;  %p855_p6 = scmp.lt.s32.totalorder %s57_s29, %s57_s29 }
  0x12   :  { %p851_p5 = scmp.ne.s32.totalorder %s57_s29, %s850_s8  ;;  %p856_p7 = scmp.lt.s32.totalorder %s850_s8, %s850_s8 }
  0x14   :  { %p857_p8 = por %p856_p7, %p855_p6 }
  0x16   :  { %p858_p9 = pnand %p857_p8, %p851_p5 }
  0x18   :  { %861 = shalt.err (!%p858_p9)
}
  0x19   :  { %62 = dma.hbm_to_vmem [thread:$0]  %s1101_s3, 1024, %s57_s29, [#allocation9], %s951_s24, %s951_s24, %s952_s25  }
  0x1a   :  { %s870_s1 = scalar_lea.vmem %s21_s7, 256  ;;  %p875_p11 = scmp.lt.s32.totalorder %s21_s7, %s21_s7 }
  0x1b   :  { %p871_p10 = scmp.ne.s32.totalorder %s21_s7, %s870_s1  ;;  %p876_p12 = scmp.lt.s32.totalorder %s870_s1, %s870_s1 }
  0x1d   :  { %p877_p13 = por %p876_p12, %p875_p11 }
  0x1f   :  { %p878_p0 = pnand %p877_p13, %p871_p10 }
  0x21   :  { %881 = shalt.err (!%p878_p0)
}
  0x22   :  { %s955_s11 = smov 128   ;;  %s956_s12 = smov 8  }
  0x23   :  { %26 = dma.hbm_to_vmem [thread:$0]  %s1098_s0, 256, %s21_s7, [#allocation3], %s955_s11, %s955_s11, %s956_s12  }
  0x24   :  { %s957_s15 = smov [#allocation7]   ;;  %s958_s3 = smov [#allocation10]  }
  0x25   :  { %s44_s16 = sshll.u32 %s957_s15, 4  ;;  %s68_s17 = sshll.u32 %s958_s3, 4  ;;  %s45_s16 = int_to_ptr.vmem [resolvable:$true] %s44_s16  ;;  %s69_s17 = int_to_ptr.vmem [resolvable:$true] %s68_s17 }
  0x26   :  { %s890_s18 = scalar_lea.vmem %s45_s16, 1024  ;;  %p895_p2 = scmp.lt.s32.totalorder %s45_s16, %s45_s16 }
  0x27   :  { %p891_p1 = scmp.ne.s32.totalorder %s45_s16, %s890_s18  ;;  %p896_p3 = scmp.lt.s32.totalorder %s890_s18, %s890_s18 }
  0x29   :  { %p897_p4 = por %p896_p3, %p895_p2 }
  0x2b   :  { %p898_p5 = pnand %p897_p4, %p891_p1 }
  0x2d   :  { %901 = shalt.err (!%p898_p5)
}
  0x2e   :  { %50 = dma.hbm_to_vmem [thread:$0]  %s1100_s2, 1024, %s45_s16, [#allocation6], %s951_s24, %s951_s24, %s952_s25  }
  0x2f   :  { %s910_s0 = scalar_lea.vmem %s69_s17, 1024  ;;  %p915_p7 = scmp.lt.s32.totalorder %s69_s17, %s69_s17 }
  0x30   :  { %p911_p6 = scmp.ne.s32.totalorder %s69_s17, %s910_s0  ;;  %p916_p8 = scmp.lt.s32.totalorder %s910_s0, %s910_s0 }
  0x32   :  { %p917_p9 = por %p916_p8, %p915_p7 }
  0x34   :  { %p918_p10 = pnand %p917_p9, %p911_p6 }
  0x36   :  { %921 = shalt.err (!%p918_p10)
}
  0x37   :  { %74 = dma.hbm_to_vmem [thread:$0]  %s1102_s4, 1024, %s69_s17, [#allocation9], %s951_s24, %s951_s24, %s952_s25  }
  0x38   :  { %942 = dma.done.wait [#allocation3], 256  }
  0x39   :  { %943 = vsyncadd [#allocation3], 4294967040 }
  0x3a   :  { %944 = dma.done.wait [#allocation6], 2048  }
  0x3b   :  { %945 = vsyncadd [#allocation6], 4294965248 }
  0x3c   :  { %946 = dma.done.wait [#allocation9], 2048  }
  0x3d   :  { %947 = vsyncadd [#allocation9], 4294965248  ;;  %v1027_v0 = vld [vmem:[#allocation2] sm:$0xff]  ;;  %v1029_v1 = vld [vmem:[#allocation2 + $0x8] sm:$0xff]  ;;  %v959_v5 = vmov 0.0   ;;  %vm960_vm0 = vmmov 0   ;;  %v142_v45 = vlaneseq }
  0x3e   :  { %96 = vadd.xlane.f32.xlu0 %v1027_v0  ;;  %v103_v2 = vmul.f32 %v1027_v0, %v1027_v0  ;;  %v104_v3 = vmul.f32 %v1029_v1, %v1029_v1  ;;  %v774_v4 = vld [vmem:[#allocation5 + $0x38] sm:$0xff]   ;;  %682 = vmatprep.subr.bf16.mxu0 %v959_v5  ;;  %v775_v6 = vld [vmem:[#allocation5 + $0x30] sm:$0xff]   ;;  %v776_v7 = vld [vmem:[#allocation5 + $0x28] sm:$0xff]  }
  0x3f   :  { %702 = vmatprep.subr.bf16.mxu1 %v959_v5  ;;  %683 = vmatpush3.bf16.msra.mxu0 %v774_v4  ;;  %v777_v8 = vld [vmem:[#allocation5 + $0x20] sm:$0xff]   ;;  %v778_v9 = vld [vmem:[#allocation5 + $0x18] sm:$0xff]   ;;  %v779_v10 = vld [vmem:[#allocation5 + $0x10] sm:$0xff]   ;;  %v1064_v46 = vshrl.u32 %v142_v45, 7 }
  0x40   :  { %105 = vadd.xlane.f32.xlu1 %v103_v2  ;;  %684 = vmatprep.subr.bf16.mxu0 %v959_v5  ;;  %v780_v11 = vld [vmem:[#allocation5 + $0x8] sm:$0xff]   ;;  %v781_v12 = vld [vmem:[#allocation5] sm:$0xff]   ;;  %v782_v13 = vld [vmem:[#allocation7 + $0x38] sm:$0xff]  }
  0x41   :  { %698 = vmatprep.mubr.msk.bf16.mxu0 %vm960_vm0, %v959_v5  ;;  %718 = vmatprep.mubr.msk.bf16.mxu1 %vm960_vm0, %v959_v5  ;;  %v783_v37 = vld [vmem:[#allocation7 + $0x30] sm:$0xff]   ;;  %v784_v38 = vld [vmem:[#allocation7 + $0x28] sm:$0xff]   ;;  %v785_v39 = vld [vmem:[#allocation7 + $0x20] sm:$0xff]   ;;  %v144_v47 = vsub.s32 0, %v1064_v46 }
  0x42   :  { %98 = vadd.xlane.f32.xlu0 %v1029_v1  ;;  %703 = vmatpush3.bf16.msra.mxu1 %v782_v13  ;;  %v786_v40 = vld [vmem:[#allocation7 + $0x18] sm:$0xff]   ;;  %v787_v41 = vld [vmem:[#allocation7 + $0x10] sm:$0xff]   ;;  %v788_v42 = vld [vmem:[#allocation7 + $0x8] sm:$0xff]  }
  0x43   :  { %685 = vmatpush3.bf16.msra.mxu0 %v775_v6  ;;  %704 = vmatprep.subr.bf16.mxu1 %v959_v5  ;;  %v789_v43 = vld [vmem:[#allocation7] sm:$0xff]   ;;  %v790_v44 = vld [vmem:[#allocation8 + $0x38] sm:$0xff]   ;;  %v1070_v48 = vld [vmem:[%s1103_s5] sm:$0x7]  ;;  %s961_s5 = smov [#allocation11]  }
  0x44   :  { %107 = vadd.xlane.f32.xlu1 %v104_v3  ;;  %686 = vmatprep.subr.bf16.mxu0 %v959_v5  ;;  %v145_v49 = vrot.slane %v1070_v48, %v144_v47  ;;  %v791_v3 = vld [vmem:[#allocation8 + $0x30] sm:$0xff]   ;;  %v792_v4 = vld [vmem:[#allocation8 + $0x28] sm:$0xff]   ;;  %v793_v6 = vld [vmem:[#allocation8 + $0x20] sm:$0xff]   ;;  %s600_s23 = sshll.u32 %s961_s5, 4  ;;  %s601_s23 = int_to_ptr.vmem [resolvable:$true] %s600_s23 }
  0x45   :  { %v803_v45 = vld [vmem:[#allocation10 + $0x10] sm:$0xff]   ;;  %v805_v47 = vld [vmem:[#allocation10] sm:$0xff]   ;;  %s922_s24 = scalar_lea.vmem %s601_s23, 256  ;;  %p927_p12 = scmp.lt.s32.totalorder %s601_s23, %s601_s23 }
  0x46   :  { %705 = vmatpush3.bf16.msra.mxu1 %v783_v37  ;;  %p923_p11 = scmp.ne.s32.totalorder %s601_s23, %s922_s24  ;;  %p928_p13 = scmp.lt.s32.totalorder %s922_s24, %s922_s24 }
  0x47   :  { %687 = vmatpush3.bf16.msra.mxu0 %v776_v7  ;;  %706 = vmatprep.subr.bf16.mxu1 %v959_v5  ;;  %v794_v7 = vld [vmem:[#allocation8 + $0x18] sm:$0xff]  }
  0x48   :  { %688 = vmatprep.subr.bf16.mxu0 %v959_v5  ;;  %p929_p0 = por %p928_p13, %p927_p12 }
  0x4a   :  { %707 = vmatpush3.bf16.msra.mxu1 %v784_v38  ;;  %p930_p1 = pnand %p929_p0, %p923_p11 }
  0x4b   :  { %689 = vmatpush3.bf16.msra.mxu0 %v777_v8  ;;  %708 = vmatprep.subr.bf16.mxu1 %v959_v5  ;;  %v795_v8 = vld [vmem:[#allocation8 + $0x10] sm:$0xff]  }
  0x4c   :  { %690 = vmatprep.subr.bf16.mxu0 %v959_v5 }
  0x4e   :  { %709 = vmatpush3.bf16.msra.mxu1 %v785_v39 }
  0x4f   :  { %691 = vmatpush3.bf16.msra.mxu0 %v778_v9  ;;  %710 = vmatprep.subr.bf16.mxu1 %v959_v5  ;;  %v796_v9 = vld [vmem:[#allocation8 + $0x8] sm:$0xff]  }
  0x50   :  { %692 = vmatprep.subr.bf16.mxu0 %v959_v5 }
  0x52   :  { %711 = vmatpush3.bf16.msra.mxu1 %v786_v40 }
  0x53   :  { %693 = vmatpush3.bf16.msra.mxu0 %v779_v10  ;;  %712 = vmatprep.subr.bf16.mxu1 %v959_v5  ;;  %v797_v10 = vld [vmem:[#allocation8] sm:$0xff]  }
  0x54   :  { %694 = vmatprep.subr.bf16.mxu0 %v959_v5 }
  0x56   :  { %713 = vmatpush3.bf16.msra.mxu1 %v787_v41 }
  0x57   :  { %695 = vmatpush3.bf16.msra.mxu0 %v780_v11  ;;  %714 = vmatprep.subr.bf16.mxu1 %v959_v5  ;;  %v264_v11 = vsub.s32 1, %v1064_v46 }
  0x58   :  { %696 = vmatprep.subr.bf16.mxu0 %v959_v5 }
  0x5a   :  { %715 = vmatpush3.bf16.msra.mxu1 %v788_v42  ;;  %v800_v42 = vld [vmem:[#allocation10 + $0x28] sm:$0xff]  }
  0x5b   :  { %697 = vmatpush3.bf16.msra.mxu0 %v781_v12  ;;  %716 = vmatprep.subr.bf16.mxu1 %v959_v5  ;;  %v265_v12 = vrot.slane %v1070_v48, %v264_v11 }
  0x5c   :  { %722 = vmatprep.subr.bf16.mxu0 %v959_v5 }
  0x5e   :  { %717 = vmatpush3.bf16.msra.mxu1 %v789_v43  ;;  %v801_v43 = vld [vmem:[#allocation10 + $0x20] sm:$0xff]  }
  0x5f   :  { %742 = vmatprep.subr.bf16.mxu1 %v959_v5 }
  0xc7   :  { %v97_v14 = vpop.xlane.xlu0 %96 }
  0xc8   :  { %v101_v15 = vmul.f32 0.0078125, %v97_v14 }
  0xc9   :  { %v106_v16 = vpop.xlane.xlu1 %105 }
  0xca   :  { %v111_v17 = vmul.f32 %v101_v15, %v101_v15  ;;  %v109_v18 = vmul.f32 0.0078125, %v106_v16  ;;  %v117_v31 = vsub.f32 %v1027_v0, %v101_v15 }
  0xcb   :  { %v99_v19 = vpop.xlane.xlu0 %98 }
  0xcc   :  { %v113_v20 = vsub.f32 %v109_v18, %v111_v17  ;;  %v102_v21 = vmul.f32 0.0078125, %v99_v19 }
  0xcd   :  { %v108_v22 = vpop.xlane.xlu1 %107 }
  0xce   :  { %v115_v23 = vmax.f32 %v113_v20, 0.0  ;;  %v112_v24 = vmul.f32 %v102_v21, %v102_v21  ;;  %v110_v25 = vmul.f32 0.0078125, %v108_v22  ;;  %v118_v32 = vsub.f32 %v1029_v1, %v102_v21 }
  0xd0   :  { %v119_v26 = vadd.f32 1e-05, %v115_v23  ;;  %v114_v27 = vsub.f32 %v110_v25, %v112_v24 }
  0xd2   :  { %v116_v28 = vmax.f32 %v114_v27, 0.0  ;;  %806 = vrsqrt.f32 %v119_v26 }
  0xd4   :  { %v120_v29 = vadd.f32 1e-05, %v116_v28 }
  0xd6   :  { %808 = vrsqrt.f32 %v120_v29 }
  0xdf   :  { %v807_v30 = vpop.eup %806 }
  0xe0   :  { %v123_v34 = vmul.f32 %v807_v30, %v117_v31  ;;  %v798_v30 = vld [vmem:[#allocation10 + $0x38] sm:$0xff]   ;;  %v799_v31 = vld [vmem:[#allocation10 + $0x30] sm:$0xff]  }
  0xe3   :  { %v809_v33 = vpop.eup %808 }
  0xe4   :  { %v124_v35 = vmul.f32 %v809_v33, %v118_v32  ;;  %v384_v32 = vsub.s32 2, %v1064_v46  ;;  %v804_v46 = vld [vmem:[#allocation10 + $0x8] sm:$0xff]  }
  0xe6   :  { %v125_v36 = vpack.c.bf16 %v124_v35, %v123_v34  ;;  %v385_v33 = vrot.slane %v1070_v48, %v384_v32 }
  0xe8   :  { %699 = vmatmul.mubr.bf16.vlgmr.msra.gmra.mxu0 %v125_v36 }
  0xe9   :  { %738 = vmatprep.mubr.msk.bf16.mxu0 %vm960_vm0, %v959_v5  ;;  %723 = vmatpush3.bf16.msra.mxu0 %v790_v44  ;;  %v802_v44 = vld [vmem:[#allocation10 + $0x18] sm:$0xff]  }
  0xea   :  { %724 = vmatprep.subr.bf16.mxu0 %v959_v5 }
  0xed   :  { %725 = vmatpush3.bf16.msra.mxu0 %v791_v3 }
  0xee   :  { %726 = vmatprep.subr.bf16.mxu0 %v959_v5 }
  0xf1   :  { %727 = vmatpush3.bf16.msra.mxu0 %v792_v4 }
  0xf2   :  { %728 = vmatprep.subr.bf16.mxu0 %v959_v5 }
  0xf5   :  { %729 = vmatpush3.bf16.msra.mxu0 %v793_v6 }
  0xf6   :  { %730 = vmatprep.subr.bf16.mxu0 %v959_v5 }
  0xf9   :  { %731 = vmatpush3.bf16.msra.mxu0 %v794_v7 }
  0xfa   :  { %732 = vmatprep.subr.bf16.mxu0 %v959_v5 }
  0xfd   :  { %733 = vmatpush3.bf16.msra.mxu0 %v795_v8 }
  0xfe   :  { %734 = vmatprep.subr.bf16.mxu0 %v959_v5 }
 0x101   :  { %735 = vmatpush3.bf16.msra.mxu0 %v796_v9 }
 0x102   :  { %736 = vmatprep.subr.bf16.mxu0 %v959_v5 }
 0x105   :  { %737 = vmatpush3.bf16.msra.mxu0 %v797_v10 }
 0x1a8   :  { %v228_v50 = vpop.f32.mrf.mxu0 }
 0x1a9   :  { %v229_v51 = vadd.f32 %v228_v50, %v145_v49 }
 0x1aa   :  { %v700_v52 = vpop.f32.mrf.mxu0 }
 0x1ab   :  { %v237_v53 = vmul.f32 0.70710677, %v229_v51  ;;  %v235_v61 = vmul.f32 0.5, %v229_v51 }
 0x1ac   :  { %v231_v54 = vpop.f32.mrf.mxu0 }
 0x1ad   :  { %810 = verf.f32 %v237_v53  ;;  %v232_v55 = vadd.f32 %v231_v54, %v145_v49 }
 0x1ae   :  { %v701_v56 = vpop.f32.mrf.mxu0 }
 0x1af   :  { %v238_v57 = vmul.f32 0.70710677, %v232_v55  ;;  %v236_v62 = vmul.f32 0.5, %v232_v55 }
 0x1b1   :  { %812 = verf.f32 %v238_v57 }
 0x1ba   :  { %v811_v58 = vpop.eup %810 }
 0x1bb   :  { %v241_v59 = vadd.f32 1.0, %v811_v58 }
 0x1bd   :  { %v243_v0 = vmul.f32 %v241_v59, %v235_v61 }
 0x1be   :  { %v813_v60 = vpop.eup %812 }
 0x1bf   :  { %v242_v63 = vadd.f32 1.0, %v813_v60 }
 0x1c1   :  { %v244_v1 = vmul.f32 %v242_v63, %v236_v62 }
 0x1c3   :  { %v245_v2 = vpack.c.bf16 %v244_v1, %v243_v0 }
 0x1c5   :  { %719 = vmatmul.mubr.bf16.vlgmr.msra.gmra.mxu1 %v245_v2 }
 0x1c6   :  { %758 = vmatprep.mubr.msk.bf16.mxu1 %vm960_vm0, %v959_v5  ;;  %743 = vmatpush3.bf16.msra.mxu1 %v798_v30 }
 0x1c7   :  { %744 = vmatprep.subr.bf16.mxu1 %v959_v5 }
 0x1ca   :  { %745 = vmatpush3.bf16.msra.mxu1 %v799_v31 }
 0x1cb   :  { %746 = vmatprep.subr.bf16.mxu1 %v959_v5 }
 0x1ce   :  { %747 = vmatpush3.bf16.msra.mxu1 %v800_v42 }
 0x1cf   :  { %748 = vmatprep.subr.bf16.mxu1 %v959_v5 }
 0x1d2   :  { %749 = vmatpush3.bf16.msra.mxu1 %v801_v43 }
 0x1d3   :  { %750 = vmatprep.subr.bf16.mxu1 %v959_v5 }
 0x1d6   :  { %751 = vmatpush3.bf16.msra.mxu1 %v802_v44 }
 0x1d7   :  { %752 = vmatprep.subr.bf16.mxu1 %v959_v5 }
 0x1da   :  { %753 = vmatpush3.bf16.msra.mxu1 %v803_v45 }
 0x1db   :  { %754 = vmatprep.subr.bf16.mxu1 %v959_v5 }
 0x1de   :  { %755 = vmatpush3.bf16.msra.mxu1 %v804_v46 }
 0x1df   :  { %756 = vmatprep.subr.bf16.mxu1 %v959_v5 }
 0x1e2   :  { %757 = vmatpush3.bf16.msra.mxu1 %v805_v47 }
 0x285   :  { %v348_v13 = vpop.f32.mrf.mxu1 }
 0x286   :  { %v349_v14 = vadd.f32 %v348_v13, %v265_v12 }
 0x287   :  { %v720_v15 = vpop.f32.mrf.mxu1 }
 0x288   :  { %v357_v16 = vmul.f32 0.70710677, %v349_v14  ;;  %v355_v24 = vmul.f32 0.5, %v349_v14 }
 0x289   :  { %v351_v17 = vpop.f32.mrf.mxu1 }
 0x28a   :  { %814 = verf.f32 %v357_v16  ;;  %v352_v18 = vadd.f32 %v351_v17, %v265_v12 }
 0x28b   :  { %v721_v19 = vpop.f32.mrf.mxu1 }
 0x28c   :  { %v358_v20 = vmul.f32 0.70710677, %v352_v18  ;;  %v356_v25 = vmul.f32 0.5, %v352_v18 }
 0x28e   :  { %816 = verf.f32 %v358_v20 }
 0x297   :  { %v815_v21 = vpop.eup %814 }
 0x298   :  { %v361_v22 = vadd.f32 1.0, %v815_v21 }
 0x29a   :  { %v363_v27 = vmul.f32 %v361_v22, %v355_v24 }
 0x29b   :  { %v817_v23 = vpop.eup %816 }
 0x29c   :  { %v362_v26 = vadd.f32 1.0, %v817_v23 }
 0x29e   :  { %v364_v28 = vmul.f32 %v362_v26, %v356_v25 }
 0x2a0   :  { %v365_v29 = vpack.c.bf16 %v364_v28, %v363_v27 }
 0x2a2   :  { %739 = vmatmul.mubr.bf16.vlgmr.msra.gmra.mxu0 %v365_v29 }
 0x362   :  { %v468_v34 = vpop.f32.mrf.mxu0 }
 0x363   :  { %v469_v35 = vadd.f32 %v468_v34, %v385_v33 }
 0x364   :  { %v740_v36 = vpop.f32.mrf.mxu0 }
 0x365   :  { %v475_v37 = vmul.f32 %v469_v35, %v469_v35 }
 0x366   :  { %v471_v38 = vpop.f32.mrf.mxu0 }
 0x367   :  { %v472_v39 = vadd.f32 %v471_v38, %v385_v33  ;;  %477 = vadd.xlane.f32.xlu0 %v475_v37 }
 0x368   :  { %v741_v40 = vpop.f32.mrf.mxu0 }
 0x369   :  { %v476_v41 = vmul.f32 %v472_v39, %v472_v39 }
 0x36b   :  { %479 = vadd.xlane.f32.xlu1 %v476_v41 }
 0x3f0   :  { %v478_v48 = vpop.xlane.xlu0 %477 }
 0x3f1   :  { %v481_v49 = vmax.f32 %v478_v48, 1e-16 }
 0x3f3   :  { %818 = vrsqrt.f32 %v481_v49 }
 0x3f4   :  { %v480_v50 = vpop.xlane.xlu1 %479 }
 0x3f5   :  { %v482_v51 = vmax.f32 %v480_v50, 1e-16 }
 0x3f7   :  { %820 = vrsqrt.f32 %v482_v51 }
 0x400   :  { %v819_v52 = vpop.eup %818 }
 0x401   :  { %v485_v54 = vmul.f32 %v819_v52, %v469_v35 }
 0x404   :  { %v821_v53 = vpop.eup %820 }
 0x405   :  { %v486_v55 = vmul.f32 %v821_v53, %v472_v39 }
 0x407   :  { %v487_v56 = vpack.c.bf16 %v486_v55, %v485_v54 }
 0x409   :  { %759 = vmatmul.mubr.bf16.vlgmr.msra.gmra.mxu1 %v487_v56 }
 0x4c9   :  { %v586_v57 = vpop.f32.mrf.mxu1 }
 0x4ca   :  { %593 = vst [vmem:[#allocation11] sm:$0xff] %v586_v57 }
 0x4cb   :  { %v760_v58 = vpop.f32.mrf.mxu1 }
 0x4cd   :  { %v589_v5 = vpop.f32.mrf.mxu1 }
 0x4ce   :  { %594 = vst [vmem:[#allocation11 + $0x8] sm:$0xff] %v589_v5 }
 0x4cf   :  { %v761_v59 = vpop.f32.mrf.mxu1 }
 0x4d0   :  { %933 = shalt.err (!%p930_p1)
}
 0x4d1   :  { %606 = dma.vmem_to_hbm [thread:$0]  %s601_s23, 256, %s1104_s6, [#allocation4], %s955_s11, %s955_s11, %s956_s12  }
 0x4d2   :  { %948 = dma.done.wait [#allocation4], 256  }
 0x4d3   :  { %949 = vsyncadd [#allocation4], 4294967040 }
 0x4d4   :  { %610 = vsyncpa [#allocation3], 1 }
 0x4d5   :  { %611 = vsyncpa [#allocation6], 1 }
 0x4d6   :  { %612 = vsyncpa [#allocation9], 1 }
 0x4d7   :  { %613 = vsyncpa [#allocation4], 1 }

// kernel: tpu_custom_call.1
= control target key start
LH: loop header
LB: loop body
LE: loop exit
PB: predicated region body
PF: predicated region fallthrough
CT: control target
= control target key end

     0   :  { %11 = vsyncpa [#allocation3], 0  ;;  %s1098_s0 = inlined_call_operand.hbm [shape: f32[16,128], index: 0, kind: input, shape index: {}]   ;;  %s1099_s1 = inlined_call_operand.hbm [shape: bf16[128,128], index: 1, kind: input, shape index: {}]   ;;  %s1100_s2 = inlined_call_operand.hbm [shape: bf16[128,128], index: 2, kind: input, shape index: {}]   ;;  %s1101_s3 = inlined_call_operand.hbm [shape: bf16[128,128], index: 3, kind: input, shape index: {}]   ;;  %s1102_s4 = inlined_call_operand.hbm [shape: bf16[128,128], index: 4, kind: input, shape index: {}]   ;;  %s1103_s5 = inlined_call_operand.vmem [shape: f32[3,128], index: 5, kind: input, shape index: {}]   ;;  %s1104_s6 = inlined_call_operand.hbm [shape: f32[16,128], index: 6, kind: output, shape index: {}]  }
   0x1   :  { %12 = vsyncpa [#allocation6], 0 }
   0x2   :  { %13 = vsyncpa [#allocation9], 0 }
   0x3   :  { %14 = vsyncpa [#allocation4], 0  ;;  %s950_s21 = smov [#allocation5]  }
   0x4   :  { %s32_s22 = sshll.u32 %s950_s21, 4  ;;  %s33_s22 = int_to_ptr.vmem [resolvable:$true] %s32_s22 }
   0x5   :  { %s830_s23 = scalar_lea.vmem %s33_s22, 1024  ;;  %p835_p1 = scmp.lt.s32.totalorder %s33_s22, %s33_s22 }
   0x6   :  { %p831_p0 = scmp.ne.s32.totalorder %s33_s22, %s830_s23  ;;  %p836_p2 = scmp.lt.s32.totalorder %s830_s23, %s830_s23 }
   0x8   :  { %p837_p3 = por %p836_p2, %p835_p1 }
   0xa   :  { %p838_p4 = pnand %p837_p3, %p831_p0 }
   0xc   :  { %841 = shalt.err (!%p838_p4)
}
   0xd   :  { %s951_s24 = smov 64   ;;  %s952_s25 = smov 4  }
   0xe   :  { %38 = dma.hbm_to_vmem [thread:$0]  %s1099_s1, 1024, %s33_s22, [#allocation6], %s951_s24, %s951_s24, %s952_s25  }
   0xf   :  { %s953_s28 = smov [#allocation8]   ;;  %s954_s30 = smov [#allocation2]  }
  0x10   :  { %s56_s29 = sshll.u32 %s953_s28, 4  ;;  %s20_s7 = sshll.u32 %s954_s30, 4  ;;  %s57_s29 = int_to_ptr.vmem [resolvable:$true] %s56_s29  ;;  %s21_s7 = int_to_ptr.vmem [resolvable:$true] %s20_s7 }
  0x11   :  { %s850_s8 = scalar_lea.vmem %s57_s29, 1024  ;;  %p855_p6 = scmp.lt.s32.totalorder %s57_s29, %s57_s29 }
  0x12   :  { %p851_p5 = scmp.ne.s32.totalorder %s57_s29, %s850_s8  ;;  %p856_p7 = scmp.lt.s32.totalorder %s850_s8, %s850_s8 }
  0x14   :  { %p857_p8 = por %p856_p7, %p855_p6 }
  0x16   :  { %p858_p9 = pnand %p857_p8, %p851_p5 }
  0x18   :  { %861 = shalt.err (!%p858_p9)
}
  0x19   :  { %62 = dma.hbm_to_vmem [thread:$0]  %s1101_s3, 1024, %s57_s29, [#allocation9], %s951_s24, %s951_s24, %s952_s25  }
  0x1a   :  { %s870_s1 = scalar_lea.vmem %s21_s7, 256  ;;  %p875_p11 = scmp.lt.s32.totalorder %s21_s7, %s21_s7 }
  0x1b   :  { %p871_p10 = scmp.ne.s32.totalorder %s21_s7, %s870_s1  ;;  %p876_p12 = scmp.lt.s32.totalorder %s870_s1, %s870_s1 }
  0x1d   :  { %p877_p13 = por %p876_p12, %p875_p11 }
  0x1f   :  { %p878_p0 = pnand %p877_p13, %p871_p10 }
  0x21   :  { %881 = shalt.err (!%p878_p0)
}
  0x22   :  { %s955_s11 = smov 128   ;;  %s956_s12 = smov 8  }
  0x23   :  { %26 = dma.hbm_to_vmem [thread:$0]  %s1098_s0, 256, %s21_s7, [#allocation3], %s955_s11, %s955_s11, %s956_s12  }
  0x24   :  { %s957_s15 = smov [#allocation7]   ;;  %s958_s3 = smov [#allocation10]  }
  0x25   :  { %s44_s16 = sshll.u32 %s957_s15, 4  ;;  %s68_s17 = sshll.u32 %s958_s3, 4  ;;  %s45_s16 = int_to_ptr.vmem [resolvable:$true] %s44_s16  ;;  %s69_s17 = int_to_ptr.vmem [resolvable:$true] %s68_s17 }
  0x26   :  { %s890_s18 = scalar_lea.vmem %s45_s16, 1024  ;;  %p895_p2 = scmp.lt.s32.totalorder %s45_s16, %s45_s16 }
  0x27   :  { %p891_p1 = scmp.ne.s32.totalorder %s45_s16, %s890_s18  ;;  %p896_p3 = scmp.lt.s32.totalorder %s890_s18, %s890_s18 }
  0x29   :  { %p897_p4 = por %p896_p3, %p895_p2 }
  0x2b   :  { %p898_p5 = pnand %p897_p4, %p891_p1 }
  0x2d   :  { %901 = shalt.err (!%p898_p5)
}
  0x2e   :  { %50 = dma.hbm_to_vmem [thread:$0]  %s1100_s2, 1024, %s45_s16, [#allocation6], %s951_s24, %s951_s24, %s952_s25  }
  0x2f   :  { %s910_s0 = scalar_lea.vmem %s69_s17, 1024  ;;  %p915_p7 = scmp.lt.s32.totalorder %s69_s17, %s69_s17 }
  0x30   :  { %p911_p6 = scmp.ne.s32.totalorder %s69_s17, %s910_s0  ;;  %p916_p8 = scmp.lt.s32.totalorder %s910_s0, %s910_s0 }
  0x32   :  { %p917_p9 = por %p916_p8, %p915_p7 }
  0x34   :  { %p918_p10 = pnand %p917_p9, %p911_p6 }
  0x36   :  { %921 = shalt.err (!%p918_p10)
}
  0x37   :  { %74 = dma.hbm_to_vmem [thread:$0]  %s1102_s4, 1024, %s69_s17, [#allocation9], %s951_s24, %s951_s24, %s952_s25  }
  0x38   :  { %942 = dma.done.wait [#allocation3], 256  }
  0x39   :  { %943 = vsyncadd [#allocation3], 4294967040 }
  0x3a   :  { %944 = dma.done.wait [#allocation6], 2048  }
  0x3b   :  { %945 = vsyncadd [#allocation6], 4294965248 }
  0x3c   :  { %946 = dma.done.wait [#allocation9], 2048  }
  0x3d   :  { %947 = vsyncadd [#allocation9], 4294965248  ;;  %v1027_v0 = vld [vmem:[#allocation2] sm:$0xff]  ;;  %v1029_v1 = vld [vmem:[#allocation2 + $0x8] sm:$0xff]  ;;  %v959_v5 = vmov 0.0   ;;  %vm960_vm0 = vmmov 0   ;;  %v142_v45 = vlaneseq }
  0x3e   :  { %96 = vadd.xlane.f32.xlu0 %v1027_v0  ;;  %v103_v2 = vmul.f32 %v1027_v0, %v1027_v0  ;;  %v104_v3 = vmul.f32 %v1029_v1, %v1029_v1  ;;  %v774_v4 = vld [vmem:[#allocation5 + $0x38] sm:$0xff]   ;;  %682 = vmatprep.subr.bf16.mxu0 %v959_v5  ;;  %v775_v6 = vld [vmem:[#allocation5 + $0x30] sm:$0xff]   ;;  %v776_v7 = vld [vmem:[#allocation5 + $0x28] sm:$0xff]  }
  0x3f   :  { %702 = vmatprep.subr.bf16.mxu1 %v959_v5  ;;  %683 = vmatpush3.bf16.msra.mxu0 %v774_v4  ;;  %v777_v8 = vld [vmem:[#allocation5 + $0x20] sm:$0xff]   ;;  %v778_v9 = vld [vmem:[#allocation5 + $0x18] sm:$0xff]   ;;  %v779_v10 = vld [vmem:[#allocation5 + $0x10] sm:$0xff]   ;;  %v1064_v46 = vshrl.u32 %v142_v45, 7 }
  0x40   :  { %105 = vadd.xlane.f32.xlu1 %v103_v2  ;;  %684 = vmatprep.subr.bf16.mxu0 %v959_v5  ;;  %v780_v11 = vld [vmem:[#allocation5 + $0x8] sm:$0xff]   ;;  %v781_v12 = vld [vmem:[#allocation5] sm:$0xff]   ;;  %v782_v13 = vld [vmem:[#allocation7 + $0x38] sm:$0xff]  }
  0x41   :  { %698 = vmatprep.mubr.msk.bf16.mxu0 %vm960_vm0, %v959_v5  ;;  %718 = vmatprep.mubr.msk.bf16.mxu1 %vm960_vm0, %v959_v5  ;;  %v783_v37 = vld [vmem:[#allocation7 + $0x30] sm:$0xff]   ;;  %v784_v38 = vld [vmem:[#allocation7 + $0x28] sm:$0xff]   ;;  %v785_v39 = vld [vmem:[#allocation7 + $0x20] sm:$0xff]   ;;  %v144_v47 = vsub.s32 0, %v1064_v46 }
  0x42   :  { %98 = vadd.xlane.f32.xlu0 %v1029_v1  ;;  %703 = vmatpush3.bf16.msra.mxu1 %v782_v13  ;;  %v786_v40 = vld [vmem:[#allocation7 + $0x18] sm:$0xff]   ;;  %v787_v41 = vld [vmem:[#allocation7 + $0x10] sm:$0xff]   ;;  %v788_v42 = vld [vmem:[#allocation7 + $0x8] sm:$0xff]  }
  0x43   :  { %685 = vmatpush3.bf16.msra.mxu0 %v775_v6  ;;  %704 = vmatprep.subr.bf16.mxu1 %v959_v5  ;;  %v789_v43 = vld [vmem:[#allocation7] sm:$0xff]   ;;  %v790_v44 = vld [vmem:[#allocation8 + $0x38] sm:$0xff]   ;;  %v1070_v48 = vld [vmem:[%s1103_s5] sm:$0x7]  ;;  %s961_s5 = smov [#allocation11]  }
  0x44   :  { %107 = vadd.xlane.f32.xlu1 %v104_v3  ;;  %686 = vmatprep.subr.bf16.mxu0 %v959_v5  ;;  %v145_v49 = vrot.slane %v1070_v48, %v144_v47  ;;  %v791_v3 = vld [vmem:[#allocation8 + $0x30] sm:$0xff]   ;;  %v792_v4 = vld [vmem:[#allocation8 + $0x28] sm:$0xff]   ;;  %v793_v6 = vld [vmem:[#allocation8 + $0x20] sm:$0xff]   ;;  %s600_s23 = sshll.u32 %s961_s5, 4  ;;  %s601_s23 = int_to_ptr.vmem [resolvable:$true] %s600_s23 }
  0x45   :  { %v803_v45 = vld [vmem:[#allocation10 + $0x10] sm:$0xff]   ;;  %v805_v47 = vld [vmem:[#allocation10] sm:$0xff]   ;;  %s922_s24 = scalar_lea.vmem %s601_s23, 256  ;;  %p927_p12 = scmp.lt.s32.totalorder %s601_s23, %s601_s23 }
  0x46   :  { %705 = vmatpush3.bf16.msra.mxu1 %v783_v37  ;;  %p923_p11 = scmp.ne.s32.totalorder %s601_s23, %s922_s24  ;;  %p928_p13 = scmp.lt.s32.totalorder %s922_s24, %s922_s24 }
  0x47   :  { %687 = vmatpush3.bf16.msra.mxu0 %v776_v7  ;;  %706 = vmatprep.subr.bf16.mxu1 %v959_v5  ;;  %v794_v7 = vld [vmem:[#allocation8 + $0x18] sm:$0xff]  }
  0x48   :  { %688 = vmatprep.subr.bf16.mxu0 %v959_v5  ;;  %p929_p0 = por %p928_p13, %p927_p12 }
  0x4a   :  { %707 = vmatpush3.bf16.msra.mxu1 %v784_v38  ;;  %p930_p1 = pnand %p929_p0, %p923_p11 }
  0x4b   :  { %689 = vmatpush3.bf16.msra.mxu0 %v777_v8  ;;  %708 = vmatprep.subr.bf16.mxu1 %v959_v5  ;;  %v795_v8 = vld [vmem:[#allocation8 + $0x10] sm:$0xff]  }
  0x4c   :  { %690 = vmatprep.subr.bf16.mxu0 %v959_v5 }
  0x4e   :  { %709 = vmatpush3.bf16.msra.mxu1 %v785_v39 }
  0x4f   :  { %691 = vmatpush3.bf16.msra.mxu0 %v778_v9  ;;  %710 = vmatprep.subr.bf16.mxu1 %v959_v5  ;;  %v796_v9 = vld [vmem:[#allocation8 + $0x8] sm:$0xff]  }
  0x50   :  { %692 = vmatprep.subr.bf16.mxu0 %v959_v5 }
  0x52   :  { %711 = vmatpush3.bf16.msra.mxu1 %v786_v40 }
  0x53   :  { %693 = vmatpush3.bf16.msra.mxu0 %v779_v10  ;;  %712 = vmatprep.subr.bf16.mxu1 %v959_v5  ;;  %v797_v10 = vld [vmem:[#allocation8] sm:$0xff]  }
  0x54   :  { %694 = vmatprep.subr.bf16.mxu0 %v959_v5 }
  0x56   :  { %713 = vmatpush3.bf16.msra.mxu1 %v787_v41 }
  0x57   :  { %695 = vmatpush3.bf16.msra.mxu0 %v780_v11  ;;  %714 = vmatprep.subr.bf16.mxu1 %v959_v5  ;;  %v264_v11 = vsub.s32 1, %v1064_v46 }
  0x58   :  { %696 = vmatprep.subr.bf16.mxu0 %v959_v5 }
  0x5a   :  { %715 = vmatpush3.bf16.msra.mxu1 %v788_v42  ;;  %v800_v42 = vld [vmem:[#allocation10 + $0x28] sm:$0xff]  }
  0x5b   :  { %697 = vmatpush3.bf16.msra.mxu0 %v781_v12  ;;  %716 = vmatprep.subr.bf16.mxu1 %v959_v5  ;;  %v265_v12 = vrot.slane %v1070_v48, %v264_v11 }
  0x5c   :  { %722 = vmatprep.subr.bf16.mxu0 %v959_v5 }
  0x5e   :  { %717 = vmatpush3.bf16.msra.mxu1 %v789_v43  ;;  %v801_v43 = vld [vmem:[#allocation10 + $0x20] sm:$0xff]  }
  0x5f   :  { %742 = vmatprep.subr.bf16.mxu1 %v959_v5 }
  0xc7   :  { %v97_v14 = vpop.xlane.xlu0 %96 }
  0xc8   :  { %v101_v15 = vmul.f32 0.0078125, %v97_v14 }
  0xc9   :  { %v106_v16 = vpop.xlane.xlu1 %105 }
  0xca   :  { %v111_v17 = vmul.f32 %v101_v15, %v101_v15  ;;  %v109_v18 = vmul.f32 0.0078125, %v106_v16  ;;  %v117_v31 = vsub.f32 %v1027_v0, %v101_v15 }
  0xcb   :  { %v99_v19 = vpop.xlane.xlu0 %98 }
  0xcc   :  { %v113_v20 = vsub.f32 %v109_v18, %v111_v17  ;;  %v102_v21 = vmul.f32 0.0078125, %v99_v19 }
  0xcd   :  { %v108_v22 = vpop.xlane.xlu1 %107 }
  0xce   :  { %v115_v23 = vmax.f32 %v113_v20, 0.0  ;;  %v112_v24 = vmul.f32 %v102_v21, %v102_v21  ;;  %v110_v25 = vmul.f32 0.0078125, %v108_v22  ;;  %v118_v32 = vsub.f32 %v1029_v1, %v102_v21 }
  0xd0   :  { %v119_v26 = vadd.f32 1e-05, %v115_v23  ;;  %v114_v27 = vsub.f32 %v110_v25, %v112_v24 }
  0xd2   :  { %v116_v28 = vmax.f32 %v114_v27, 0.0  ;;  %806 = vrsqrt.f32 %v119_v26 }
  0xd4   :  { %v120_v29 = vadd.f32 1e-05, %v116_v28 }
  0xd6   :  { %808 = vrsqrt.f32 %v120_v29 }
  0xdf   :  { %v807_v30 = vpop.eup %806 }
  0xe0   :  { %v123_v34 = vmul.f32 %v807_v30, %v117_v31  ;;  %v798_v30 = vld [vmem:[#allocation10 + $0x38] sm:$0xff]   ;;  %v799_v31 = vld [vmem:[#allocation10 + $0x30] sm:$0xff]  }
  0xe3   :  { %v809_v33 = vpop.eup %808 }
  0xe4   :  { %v124_v35 = vmul.f32 %v809_v33, %v118_v32  ;;  %v384_v32 = vsub.s32 2, %v1064_v46  ;;  %v804_v46 = vld [vmem:[#allocation10 + $0x8] sm:$0xff]  }
  0xe6   :  { %v125_v36 = vpack.c.bf16 %v124_v35, %v123_v34  ;;  %v385_v33 = vrot.slane %v1070_v48, %v384_v32 }
  0xe8   :  { %699 = vmatmul.mubr.bf16.vlgmr.msra.gmra.mxu0 %v125_v36 }
  0xe9   :  { %738 = vmatprep.mubr.msk.bf16.mxu0 %vm960_vm0, %v959_v5  ;;  %723 = vmatpush3.bf16.msra.mxu0 %v790_v44  ;;  %v802_v44 = vld [vmem:[#allocation10 + $0x18] sm:$0xff]  }
  0xea   :  { %724 = vmatprep.subr.bf16.mxu0 %v959_v5 }
  0xed   :  { %725 = vmatpush3.bf16.msra.mxu0 %v791_v3 }
  0xee   :  { %726 = vmatprep.subr.bf16.mxu0 %v959_v5 }
  0xf1   :  { %727 = vmatpush3.bf16.msra.mxu0 %v792_v4 }
  0xf2   :  { %728 = vmatprep.subr.bf16.mxu0 %v959_v5 }
  0xf5   :  { %729 = vmatpush3.bf16.msra.mxu0 %v793_v6 }
  0xf6   :  { %730 = vmatprep.subr.bf16.mxu0 %v959_v5 }
  0xf9   :  { %731 = vmatpush3.bf16.msra.mxu0 %v794_v7 }
  0xfa   :  { %732 = vmatprep.subr.bf16.mxu0 %v959_v5 }
  0xfd   :  { %733 = vmatpush3.bf16.msra.mxu0 %v795_v8 }
  0xfe   :  { %734 = vmatprep.subr.bf16.mxu0 %v959_v5 }
 0x101   :  { %735 = vmatpush3.bf16.msra.mxu0 %v796_v9 }
 0x102   :  { %736 = vmatprep.subr.bf16.mxu0 %v959_v5 }
 0x105   :  { %737 = vmatpush3.bf16.msra.mxu0 %v797_v10 }
 0x1a8   :  { %v228_v50 = vpop.f32.mrf.mxu0 }
 0x1a9   :  { %v229_v51 = vadd.f32 %v228_v50, %v145_v49 }
 0x1aa   :  { %v700_v52 = vpop.f32.mrf.mxu0 }
 0x1ab   :  { %v237_v53 = vmul.f32 0.70710677, %v229_v51  ;;  %v235_v61 = vmul.f32 0.5, %v229_v51 }
 0x1ac   :  { %v231_v54 = vpop.f32.mrf.mxu0 }
 0x1ad   :  { %810 = verf.f32 %v237_v53  ;;  %v232_v55 = vadd.f32 %v231_v54, %v145_v49 }
 0x1ae   :  { %v701_v56 = vpop.f32.mrf.mxu0 }
 0x1af   :  { %v238_v57 = vmul.f32 0.70710677, %v232_v55  ;;  %v236_v62 = vmul.f32 0.5, %v232_v55 }
 0x1b1   :  { %812 = verf.f32 %v238_v57 }
 0x1ba   :  { %v811_v58 = vpop.eup %810 }
 0x1bb   :  { %v241_v59 = vadd.f32 1.0, %v811_v58 }
 0x1bd   :  { %v243_v0 = vmul.f32 %v241_v59, %v235_v61 }
 0x1be   :  { %v813_v60 = vpop.eup %812 }
 0x1bf   :  { %v242_v63 = vadd.f32 1.0, %v813_v60 }
 0x1c1   :  { %v244_v1 = vmul.f32 %v242_v63, %v236_v62 }
 0x1c3   :  { %v245_v2 = vpack.c.bf16 %v244_v1, %v243_v0 }
 0x1c5   :  { %719 = vmatmul.mubr.bf16.vlgmr.msra.gmra.mxu1 %v245_v2 }
 0x1c6   :  { %758 = vmatprep.mubr.msk.bf16.mxu1 %vm960_vm0, %v959_v5  ;;  %743 = vmatpush3.bf16.msra.mxu1 %v798_v30 }
 0x1c7   :  { %744 = vmatprep.subr.bf16.mxu1 %v959_v5 }
 0x1ca   :  { %745 = vmatpush3.bf16.msra.mxu1 %v799_v31 }
 0x1cb   :  { %746 = vmatprep.subr.bf16.mxu1 %v959_v5 }
 0x1ce   :  { %747 = vmatpush3.bf16.msra.mxu1 %v800_v42 }
 0x1cf   :  { %748 = vmatprep.subr.bf16.mxu1 %v959_v5 }
 0x1d2   :  { %749 = vmatpush3.bf16.msra.mxu1 %v801_v43 }
 0x1d3   :  { %750 = vmatprep.subr.bf16.mxu1 %v959_v5 }
 0x1d6   :  { %751 = vmatpush3.bf16.msra.mxu1 %v802_v44 }
 0x1d7   :  { %752 = vmatprep.subr.bf16.mxu1 %v959_v5 }
 0x1da   :  { %753 = vmatpush3.bf16.msra.mxu1 %v803_v45 }
 0x1db   :  { %754 = vmatprep.subr.bf16.mxu1 %v959_v5 }
 0x1de   :  { %755 = vmatpush3.bf16.msra.mxu1 %v804_v46 }
 0x1df   :  { %756 = vmatprep.subr.bf16.mxu1 %v959_v5 }
 0x1e2   :  { %757 = vmatpush3.bf16.msra.mxu1 %v805_v47 }
 0x285   :  { %v348_v13 = vpop.f32.mrf.mxu1 }
 0x286   :  { %v349_v14 = vadd.f32 %v348_v13, %v265_v12 }
 0x287   :  { %v720_v15 = vpop.f32.mrf.mxu1 }
 0x288   :  { %v357_v16 = vmul.f32 0.70710677, %v349_v14  ;;  %v355_v24 = vmul.f32 0.5, %v349_v14 }
 0x289   :  { %v351_v17 = vpop.f32.mrf.mxu1 }
 0x28a   :  { %814 = verf.f32 %v357_v16  ;;  %v352_v18 = vadd.f32 %v351_v17, %v265_v12 }
 0x28b   :  { %v721_v19 = vpop.f32.mrf.mxu1 }
 0x28c   :  { %v358_v20 = vmul.f32 0.70710677, %v352_v18  ;;  %v356_v25 = vmul.f32 0.5, %v352_v18 }
 0x28e   :  { %816 = verf.f32 %v358_v20 }
 0x297   :  { %v815_v21 = vpop.eup %814 }
 0x298   :  { %v361_v22 = vadd.f32 1.0, %v815_v21 }
 0x29a   :  { %v363_v27 = vmul.f32 %v361_v22, %v355_v24 }
 0x29b   :  { %v817_v23 = vpop.eup %816 }
 0x29c   :  { %v362_v26 = vadd.f32 1.0, %v817_v23 }
 0x29e   :  { %v364_v28 = vmul.f32 %v362_v26, %v356_v25 }
 0x2a0   :  { %v365_v29 = vpack.c.bf16 %v364_v28, %v363_v27 }
 0x2a2   :  { %739 = vmatmul.mubr.bf16.vlgmr.msra.gmra.mxu0 %v365_v29 }
 0x362   :  { %v468_v34 = vpop.f32.mrf.mxu0 }
 0x363   :  { %v469_v35 = vadd.f32 %v468_v34, %v385_v33 }
 0x364   :  { %v740_v36 = vpop.f32.mrf.mxu0 }
 0x365   :  { %v475_v37 = vmul.f32 %v469_v35, %v469_v35 }
 0x366   :  { %v471_v38 = vpop.f32.mrf.mxu0 }
 0x367   :  { %v472_v39 = vadd.f32 %v471_v38, %v385_v33  ;;  %477 = vadd.xlane.f32.xlu0 %v475_v37 }
 0x368   :  { %v741_v40 = vpop.f32.mrf.mxu0 }
 0x369   :  { %v476_v41 = vmul.f32 %v472_v39, %v472_v39 }
 0x36b   :  { %479 = vadd.xlane.f32.xlu1 %v476_v41 }
 0x3f0   :  { %v478_v48 = vpop.xlane.xlu0 %477 }
 0x3f1   :  { %v481_v49 = vmax.f32 %v478_v48, 1e-16 }
 0x3f3   :  { %818 = vrsqrt.f32 %v481_v49 }
 0x3f4   :  { %v480_v50 = vpop.xlane.xlu1 %479 }
 0x3f5   :  { %v482_v51 = vmax.f32 %v480_v50, 1e-16 }
 0x3f7   :  { %820 = vrsqrt.f32 %v482_v51 }
 0x400   :  { %v819_v52 = vpop.eup %818 }
 0x401   :  { %v485_v54 = vmul.f32 %v819_v52, %v469_v35 }
 0x404   :  { %v821_v53 = vpop.eup %820 }
 0x405   :  { %v486_v55 = vmul.f32 %v821_v53, %v472_v39 }
 0x407   :  { %v487_v56 = vpack.c.bf16 %v486_v55, %v485_v54 }
 0x409   :  { %759 = vmatmul.mubr.bf16.vlgmr.msra.gmra.mxu1 %v487_v56 }
 0x4c9   :  { %v586_v57 = vpop.f32.mrf.mxu1 }
 0x4ca   :  { %593 = vst [vmem:[#allocation11] sm:$0xff] %v586_v57 }
 0x4cb   :  { %v760_v58 = vpop.f32.mrf.mxu1 }
 0x4cd   :  { %v589_v5 = vpop.f32.mrf.mxu1 }
 0x4ce   :  { %594 = vst [vmem:[#allocation11 + $0x8] sm:$0xff] %v589_v5 }
 0x4cf   :  { %v761_v59 = vpop.f32.mrf.mxu1 }
 0x4d0   :  { %933 = shalt.err (!%p930_p1)
}
 0x4d1   :  { %606 = dma.vmem_to_hbm [thread:$0]  %s601_s23, 256, %s1104_s6, [#allocation4], %s955_s11, %s955_s11, %s956_s12  }
 0x4d2   :  { %948 = dma.done.wait [#allocation4], 256  }
 0x4d3   :  { %949 = vsyncadd [#allocation4], 4294967040 }
 0x4d4   :  { %610 = vsyncpa [#allocation3], 1 }
 0x4d5   :  { %611 = vsyncpa [#allocation6], 1 }
 0x4d6   :  { %612 = vsyncpa [#allocation9], 1 }
 0x4d7   :  { %613 = vsyncpa [#allocation4], 1 }

</bundles_post_ra>
